<compile_context>
chip_gen: v7x
topology: tpu7x:2x2x1
jax: 0.10.0
libtpu: 0.0.40
codegen_flags: <defaults>
</compile_context>

<pallas_src>
import functools

import jax
import jax.numpy as jnp
from jax import lax
from jax.experimental import pallas as pl
from jax.experimental.pallas import tpu as pltpu


def _round_up(x, m):
    return ((x + m - 1) // m) * m


def _vmem_capacity_bytes():
    try:
        return int(pltpu.get_tpu_info().vmem_capacity_bytes)
    except Exception:
        return 128 * 1024 * 1024  # v5e/v6e default


def _invariant_spec(block_shape, index_map):
    """BlockSpec for a grid-invariant operand: single-buffered.

    The index_map is constant across the grid, so a second pipeline buffer buys
    nothing and only burns VMEM.  Falls back to the default pipeline mode if
    this JAX build does not support per-spec buffer counts.
    """
    try:
        return pl.BlockSpec(block_shape, index_map, pipeline_mode=pl.Buffered(1))
    except Exception:
        return pl.BlockSpec(block_shape, index_map)


# ----------------------------------------------------------------------------
# Kernel 1: fused Q/K/V projection (one lane-dense (tr, 3D) store per step).
# ----------------------------------------------------------------------------
def _qkv_proj_kernel(x_ref, w_ref, qkv_ref, *, mxu_dtype):
    x = x_ref[...].astype(mxu_dtype)          # (tr, D)
    w = w_ref[...].astype(mxu_dtype)          # (D, 3D), resident, single-buffered
    qkv_ref[...] = jnp.dot(x, w, preferred_element_type=jnp.float32)


# ----------------------------------------------------------------------------
# Kernel 2: causal attention over a query block; KV chunks above the diagonal
# are skipped (compute) and zero-filled (att output).
# ----------------------------------------------------------------------------
def _attn_kernel(q_ref, k_ref, v_ref, h_ref, att_ref, m_sc, l_sc, acc_sc,
                 *, tq, tkv, n_chunks, mxu_dtype):
    qi = pl.program_id(0)
    q = q_ref[...].astype(mxu_dtype)          # (tq, D), already scaled by 1/sqrt(D)
    row0 = qi * tq

    m_sc[...] = jnp.full(m_sc.shape, -jnp.inf, jnp.float32)
    l_sc[...] = jnp.zeros(l_sc.shape, jnp.float32)
    acc_sc[...] = jnp.zeros(acc_sc.shape, jnp.float32)

    # ---- Pass 1: masked raw scores for KV chunks intersecting the causal
    #      (lower-triangular) region; zero-fill chunks strictly above it. ----
    for j in range(n_chunks):
        c0 = j * tkv
        valid = c0 < (qi + 1) * tq            # chunk overlaps columns <= last row

        @pl.when(valid)
        def _():
            k = k_ref[c0:c0 + tkv, :].astype(mxu_dtype)          # (tkv, D)
            s = lax.dot_general(q, k, (((1,), (1,)), ((), ())),
                                preferred_element_type=jnp.float32)  # (tq, tkv)
            row = row0 + lax.broadcasted_iota(jnp.int32, s.shape, 0)
            col = c0 + lax.broadcasted_iota(jnp.int32, s.shape, 1)
            s = jnp.where(col <= row, s, jnp.float32(-1000000000.0))
            att_ref[:, c0:c0 + tkv] = s
            m_sc[...] = jnp.maximum(m_sc[...], jnp.max(s, axis=-1, keepdims=True))

        @pl.when(jnp.logical_not(valid))
        def _():
            att_ref[:, c0:c0 + tkv] = jnp.zeros((tq, tkv), jnp.float32)

    # ---- Pass 2: exp / denominator / att @ V over the valid chunks only. ----
    m = m_sc[...]
    for j in range(n_chunks):
        c0 = j * tkv
        valid = c0 < (qi + 1) * tq

        @pl.when(valid)
        def _():
            p = jnp.exp(att_ref[:, c0:c0 + tkv] - m)             # (tq, tkv)
            l_sc[...] = l_sc[...] + jnp.sum(p, axis=-1, keepdims=True)
            v = v_ref[c0:c0 + tkv, :].astype(mxu_dtype)          # (tkv, D)
            acc_sc[...] = acc_sc[...] + jnp.dot(p.astype(mxu_dtype), v,
                                                preferred_element_type=jnp.float32)
            att_ref[:, c0:c0 + tkv] = p

    # ---- Finalize: EUP reciprocal + one Newton step, then normalize. ----
    l = l_sc[...]
    inv = pl.reciprocal(l, approx=True)
    inv = inv * (2.0 - l * inv)               # refine: ~1e-6 rel error, VPU-cheap
    h_ref[...] = (acc_sc[...] * inv).astype(h_ref.dtype)
    att_ref[...] = att_ref[...] * inv         # zero (masked) columns stay zero


# ----------------------------------------------------------------------------
# Wrapper
# ----------------------------------------------------------------------------
def mask_attention(x, wq, wk, wv, *, mxu_bf16=False):
    """x: [N, D] f32; wq/wk/wv: PyTorch-style Linear weights [D, D] (out, in)."""
    n, d = x.shape
    assert wq.shape == (d, d) and wk.shape == (d, d) and wv.shape == (d, d)
    f32 = jnp.float32
    x = x.astype(f32)
    mxu_dtype = jnp.bfloat16 if mxu_bf16 else f32

    # Fold 1/sqrt(d_model) into the Q weight and pre-transpose/stack once in the
    # wrapper to (D, 3D): contract-on-rows dot in-kernel, no per-step transpose.
    scale = 1.0 / jnp.sqrt(f32(d))
    w_qkv = jnp.concatenate(
        [wq.T.astype(f32) * scale, wk.T.astype(f32), wv.T.astype(f32)], axis=1)

    # --- generation-aware VMEM budgeting -------------------------------------
    vmem_cap = _vmem_capacity_bytes()
    vmem_limit = (3 * vmem_cap) // 4          # ~48 MiB on v7x, ~96 MiB on v5e/v6e
    budget = (3 * vmem_limit) // 4            # headroom for compiler scratch/temps

    n8 = _round_up(n, 8)
    kv_bytes = 2 * n8 * d * 4                 # K + V resident, single-buffered
    # Per query row: ~4 live f32 copies of the (tq, N) strip (double-buffered att
    # out block + in-kernel read/modify temporaries) plus q/h/acc rows.
    per_row = 4 * 4 * n8 + 8 * 4 * d
    hard_cap = 1024 if vmem_cap > (80 << 20) else 256   # bigger tiles on 128 MiB parts
    cap_q = (budget - kv_bytes) // max(per_row, 1)
    tq = int(max(8, min(cap_q, hard_cap, n8)))
    tq -= tq % 8
    tq = max(tq, 8)
    # TODO(synk): at very large N*D the resident K/V no longer fits v7x's 64 MiB
    # VMEM; switch to flash-style KV tiling with online softmax for that regime.

    n_pad = _round_up(n, tq)                  # pad N instead of degenerate tiles

    # KV chunking for the causal skip: static, 128-aligned column offsets (or a
    # single full-width chunk when N does not allow aligned chunking).
    n_chunks = 1
    for c in (8, 4, 2):
        if n_pad % (128 * c) == 0:
            n_chunks = c
            break
    tkv = n_pad // n_chunks

    cparams = pltpu.CompilerParams(
        dimension_semantics=("parallel",),
        vmem_limit_bytes=int(vmem_limit),
    )

    x_p = x if n_pad == n else jnp.pad(x, ((0, n_pad - n), (0, 0)))

    # --- kernel 1: fused QKV projection --------------------------------------
    tr = tq
    qkv = pl.pallas_call(
        functools.partial(_qkv_proj_kernel, mxu_dtype=mxu_dtype),
        out_shape=jax.ShapeDtypeStruct((n_pad, 3 * d), f32),
        grid=(n_pad // tr,),
        in_specs=[
            pl.BlockSpec((tr, d), lambda i: (i, 0)),
            _invariant_spec((d, 3 * d), lambda i: (0, 0)),       # resident weight
        ],
        out_specs=pl.BlockSpec((tr, 3 * d), lambda i: (i, 0)),
        compiler_params=cparams,
    )(x_p, w_qkv)

    # --- kernel 2: causal attention over query blocks ------------------------
    if d % 128 == 0:
        # Lane-aligned: consume q/k/v directly as column blocks of the fused qkv.
        q_src = k_src = v_src = qkv
        q_map = lambda i: (i, 0)
        k_map = lambda i: (0, 1)
        v_map = lambda i: (0, 2)
    else:
        # d not lane-aligned: split once in the wrapper (cheap XLA slices) so the
        # kernels never do non-128-aligned lane slicing.
        q_src, k_src, v_src = qkv[:, :d], qkv[:, d:2 * d], qkv[:, 2 * d:]
        q_map = lambda i: (i, 0)
        k_map = lambda i: (0, 0)
        v_map = lambda i: (0, 0)

    h, att = pl.pallas_call(
        functools.partial(_attn_kernel, tq=tq, tkv=tkv, n_chunks=n_chunks,
                          mxu_dtype=mxu_dtype),
        out_shape=(
            jax.ShapeDtypeStruct((n_pad, d), f32),       # h
            jax.ShapeDtypeStruct((n_pad, n_pad), f32),   # att (module output)
        ),
        grid=(n_pad // tq,),
        in_specs=[
            pl.BlockSpec((tq, d), q_map),                # query rows, pipelined
            _invariant_spec((n_pad, d), k_map),          # full K, single-buffered
            _invariant_spec((n_pad, d), v_map),          # full V, single-buffered
        ],
        out_specs=(
            pl.BlockSpec((tq, d), lambda i: (i, 0)),
            pl.BlockSpec((tq, n_pad), lambda i: (i, 0)),
        ),
        scratch_shapes=[
            pltpu.VMEM((tq, 1), f32),    # running row max
            pltpu.VMEM((tq, 1), f32),    # softmax denominator
            pltpu.VMEM((tq, d), f32),    # att @ V accumulator
        ],
        compiler_params=cparams,
    )(q_src, k_src, v_src)

    if n_pad != n:
        h = h[:n]
        att = att[:n, :n]
    return h, att


def _reference(x, wq, wk, wv):
    """Pure-JAX reference mirroring the PyTorch forward."""
    d = x.shape[-1]
    q = x @ wq.T
    k = x @ wk.T
    v = x @ wv.T
    scores = (q @ k.T) / jnp.sqrt(jnp.float32(d))
    n = x.shape[0]
    keep = jnp.tril(jnp.ones((n, n), dtype=bool))
    scores = jnp.where(keep, scores, -1000000000.0)
    att = jax.nn.softmax(scores, axis=-1)
    return att @ v, att


if __name__ == "__main__":
    N, D = 8, 32  # seq len, d_model

    key = jax.random.PRNGKey(0)
    kx, kq, kk, kv = jax.random.split(key, 4)

    x = jax.random.normal(kx, (N, D), dtype=jnp.float32)
    # Deterministic nn.Linear-like init (uniform in [-1/sqrt(D), 1/sqrt(D)]).
    bound = 1.0 / jnp.sqrt(jnp.float32(D))
    wq = jax.random.uniform(kq, (D, D), jnp.float32, -bound, bound)
    wk = jax.random.uniform(kk, (D, D), jnp.float32, -bound, bound)
    wv = jax.random.uniform(kv, (D, D), jnp.float32, -bound, bound)

    h, att = mask_attention(x, wq, wk, wv)
    jax.block_until_ready((h, att))

    h_ref, att_ref = _reference(x, wq, wk, wv)
    assert jnp.allclose(h, h_ref, atol=2e-3, rtol=2e-3), "h mismatch"
    assert jnp.allclose(att, att_ref, atol=2e-3, rtol=2e-3), "att mismatch"

    print("KERNEL_OK")
</pallas_src>

<mosaic_0001>
module attributes {stable_mosaic.version = 11 : i64} {
  func.func @_qkv_proj_kernel(%arg0: i32, %arg1: memref<8x32xf32, #tpu.memory_space<vmem>>, %arg2: memref<32x96xf32, #tpu.memory_space<vmem>>, %arg3: memref<8x96xf32, #tpu.memory_space<vmem>>) attributes {dimension_semantics = [#tpu.dimension_semantics<parallel>], iteration_bounds = array<i64: 1>, scalar_prefetch = 0 : i64, scratch_operands = 0 : i64, tpu.core_type = #tpu.core_type<tc>, window_params = [{transform_indices = @transform_0, window_bounds = array<i64: 8, 32>}, {pipeline_mode = #tpu.pipeline_mode<synchronous>, transform_indices = @transform_1, window_bounds = array<i64: 32, 96>}, {transform_indices = @transform_2, window_bounds = array<i64: 8, 96>}]} {
    %c0 = arith.constant 0 : index
    %c0_0 = arith.constant 0 : index
    %0 = vector.load %arg1[%c0, %c0_0] : memref<8x32xf32, #tpu.memory_space<vmem>>, vector<8x32xf32>
    %c0_1 = arith.constant 0 : index
    %c0_2 = arith.constant 0 : index
    %1 = vector.load %arg2[%c0_1, %c0_2] : memref<32x96xf32, #tpu.memory_space<vmem>>, vector<32x96xf32>
    %cst = arith.constant dense<0.000000e+00> : vector<8x96xf32>
    %2 = tpu.matmul %0, %1, %cst {dimension_numbers = #tpu.dot_dimension_numbers<[1], [0], [0], [1], [0, 0, 1, 1], [], []>} : vector<8x32xf32>, vector<32x96xf32>, vector<8x96xf32> -> vector<8x96xf32>
    %c0_3 = arith.constant 0 : index
    %c0_4 = arith.constant 0 : index
    %3 = vector.load %arg3[%c0_3, %c0_4] : memref<8x96xf32, #tpu.memory_space<vmem>>, vector<8x96xf32>
    tpu.vector_store %arg3[%c0_3, %c0_4], %2 {strides = array<i32>} : memref<8x96xf32, #tpu.memory_space<vmem>>, vector<8x96xf32>,
    return
  }
  func.func @transform_0(%arg0: i32) -> (i32, i32) {
    %c0_i32 = arith.constant 0 : i32
    %c0_i32_0 = arith.constant 0 : i32
    return %arg0, %c0_i32 : i32, i32
  }
  func.func @transform_1(%arg0: i32) -> (i32, i32) {
    %c0_i32 = arith.constant 0 : i32
    %c0_i32_0 = arith.constant 0 : i32
    %c0_i32_1 = arith.constant 0 : i32
    return %c0_i32, %c0_i32_0 : i32, i32
  }
  func.func @transform_2(%arg0: i32) -> (i32, i32) {
    %c0_i32 = arith.constant 0 : i32
    %c0_i32_0 = arith.constant 0 : i32
    return %arg0, %c0_i32 : i32, i32
  }
}

</mosaic_0001>

<bundles_post_ra>
// kernel: tpu_custom_call.1
= control target key start
LH: loop header
LB: loop body
LE: loop exit
PB: predicated region body
PF: predicated region fallthrough
CT: control target
= control target key end

     0   :  { %7 = vsyncpa [#allocation3], 0  ;;  %s304_s0 = inlined_call_operand.hbm [shape: f32[8,32], index: 0, kind: input, shape index: {}]   ;;  %s305_s1 = inlined_call_operand.hbm [shape: f32[32,96], index: 1, kind: input, shape index: {}]   ;;  %s306_s2 = inlined_call_operand.hbm [shape: f32[8,96], index: 2, kind: output, shape index: {}]  }
   0x1   :  { %8 = vsyncpa [#allocation6], 0 }
   0x2   :  { %9 = vsyncpa [#allocation4], 0  ;;  %s238_s9 = smov [#allocation2]   ;;  %s239_s11 = smov [#allocation5]  }
   0x3   :  { %s16_s10 = sshll.u32 %s238_s9, 4  ;;  %s25_s12 = sshll.u32 %s239_s11, 4  ;;  %s17_s10 = int_to_ptr.vmem [resolvable:$true] %s16_s10  ;;  %s261_s12 = int_to_ptr.vmem [resolvable:$true] %s25_s12 }
   0x4   :  { %s166_s15 = scalar_lea.hbm %s304_s0, 128 }
   0x5   :  { %p167_p0 = scmp.ne.s32.totalorder %s304_s0, %s166_s15  ;;  %p170_p1 = scmp.lt.u32.totalorder %s166_s15, %s304_s0 }
   0x7   :  { %p172_p2 = pnand %p170_p1, %p167_p0 }
   0x9   :  { %175 = shalt.err (!%p172_p2)
}
   0xa   :  { %s176_s20 = scalar_lea.vmem %s17_s10, 128  ;;  %p181_p4 = scmp.lt.s32.totalorder %s17_s10, %s17_s10 }
   0xb   :  { %p177_p3 = scmp.ne.s32.totalorder %s17_s10, %s176_s20  ;;  %p182_p5 = scmp.lt.s32.totalorder %s176_s20, %s176_s20 }
   0xd   :  { %p183_p6 = por %p182_p5, %p181_p4 }
   0xf   :  { %p184_p7 = pnand %p183_p6, %p177_p3 }
  0x11   :  { %187 = shalt.err (!%p184_p7)
}
  0x12   :  { %19 = dma.hbm_to_vmem [thread:$0]  %s304_s0, 128, %s17_s10, [#allocation3]  }
  0x13   :  { %s188_s25 = scalar_lea.hbm %s305_s1, 512 }
  0x14   :  { %p189_p8 = scmp.ne.s32.totalorder %s305_s1, %s188_s25  ;;  %p192_p9 = scmp.lt.u32.totalorder %s188_s25, %s305_s1 }
  0x16   :  { %p194_p10 = pnand %p192_p9, %p189_p8 }
  0x18   :  { %197 = shalt.err (!%p194_p10)
}
  0x19   :  { %s198_s30 = scalar_lea.vmem %s261_s12, 512  ;;  %p203_p12 = scmp.lt.s32.totalorder %s261_s12, %s261_s12 }
  0x1a   :  { %p199_p11 = scmp.ne.s32.totalorder %s261_s12, %s198_s30  ;;  %p204_p13 = scmp.lt.s32.totalorder %s198_s30, %s198_s30 }
  0x1c   :  { %p205_p0 = por %p204_p13, %p203_p12 }
  0x1e   :  { %p206_p1 = pnand %p205_p0, %p199_p11 }
  0x20   :  { %209 = shalt.err (!%p206_p1)
}
  0x21   :  { %s240_s0 = smov 128   ;;  %s241_s3 = smov 8  }
  0x22   :  { %31 = dma.hbm_to_vmem [thread:$0]  %s305_s1, 512, %s261_s12, [#allocation6], %s240_s0, %s240_s0, %s241_s3  }
  0x23   :  { %232 = dma.done.wait [#allocation3], 128  }
  0x24   :  { %233 = vsyncadd [#allocation3], 4294967168 }
  0x25   :  { %234 = dma.done.wait [#allocation6], 512  }
  0x26   :  { %235 = vsyncadd [#allocation6], 4294966784  ;;  %v242_v0 = vmov 0.0|0.0   ;;  %vm243_vm0 = vmmov 0   ;;  %v244_v1 = vmov 0.0   ;;  %v39_v2 = vld [vmem:[#allocation5] sm:$0xff] }
  0x27   :  { %152 = vmatprep.subr.bf16.mxu0 %v242_v0  ;;  %149 = vmatprep.mubr.msk.f32.mxu0 %vm243_vm0, %v244_v1  ;;  %v40_v3 = vld [vmem:[#allocation5 + $0x8] sm:$0xff]  ;;  %v41_v4 = vld [vmem:[#allocation5 + $0x10] sm:$0xff]  ;;  %v42_v6 = vld [vmem:[#allocation5 + $0x18] sm:$0xff]  ;;  %vm43_vm1 = vcmask 261120   ;;  %s245_s1 = smov [#allocation7]   ;;  %vm117_vm2 = vcmask 785408  }
  0x28   :  { %v153_v5 = vpack.c.bf16 %v40_v3, %v39_v2  ;;  %v156_v7 = vpack.c.bf16 %v42_v6, %v41_v4  ;;  %v38_v8 = vld [vmem:[#allocation2] sm:$0xff]  ;;  %s125_s6 = sshll.u32 %s245_s1, 4  ;;  %s126_s6 = int_to_ptr.vmem [resolvable:$true] %s125_s6 }
  0x29   :  { %s210_s7 = scalar_lea.vmem %s126_s6, 128  ;;  %p215_p3 = scmp.lt.s32.totalorder %s126_s6, %s126_s6 }
  0x2a   :  { %154 = vmatpush3.bf16.msra.mxu0 %v153_v5  ;;  %p211_p2 = scmp.ne.s32.totalorder %s126_s6, %s210_s7  ;;  %p216_p4 = scmp.lt.s32.totalorder %s210_s7, %s210_s7 }
  0x2b   :  { %155 = vmatprep.subr.bf16.mxu0 %v242_v0 }
  0x2c   :  { %p217_p5 = por %p216_p4, %p215_p3 }
  0x2e   :  { %157 = vmatpush3.bf16.msra.mxu0 %v156_v7  ;;  %p218_p6 = pnand %p217_p5, %p211_p2 }
  0x31   :  { %150 = vmatmul.mubr.msk.f32.vlgmr.msra.gmra.mrb[0].mxu0 %vm43_vm1, %v38_v8 }
 0x104   :  { %v113_v9 = vpop.f32.mrb[0].mxu0 }
 0x105   :  { %v151_v10 = vpop.f32.mrb[1].mxu0  ;;  %118 = vst.msk [vmem:[#allocation7] sm:$0xff] %vm117_vm2, %v113_v9 }
 0x106   :  { %221 = shalt.err (!%p218_p6)
}
 0x107   :  { %s222_s10 = scalar_lea.hbm %s306_s2, 128 }
 0x108   :  { %p223_p7 = scmp.ne.s32.totalorder %s306_s2, %s222_s10  ;;  %p226_p8 = scmp.lt.u32.totalorder %s222_s10, %s306_s2 }
 0x10a   :  { %p228_p9 = pnand %p226_p8, %p223_p7 }
 0x10c   :  { %231 = shalt.err (!%p228_p9)
}
 0x10d   :  { %128 = dma.vmem_to_hbm [thread:$0]  %s126_s6, 128, %s306_s2, [#allocation4]  }
 0x10e   :  { %236 = dma.done.wait [#allocation4], 128  }
 0x10f   :  { %237 = vsyncadd [#allocation4], 4294967168 }
 0x110   :  { %132 = vsyncpa [#allocation3], 1 }
 0x111   :  { %133 = vsyncpa [#allocation6], 1 }
 0x112   :  { %134 = vsyncpa [#allocation4], 1 }

</bundles_post_ra>
